<compile_context>
chip_gen: v5e
topology: v5e:2x2
jax: 0.10.0
libtpu: 0.0.40
codegen_flags: <defaults>
</compile_context>

<pallas_src>
import functools

import jax
import jax.numpy as jnp
from jax.experimental import pallas as pl
from jax.experimental.pallas import tpu as pltpu


def _round_up(x, m):
    return ((x + m - 1) // m) * m


def decoder_kernel(x_ref, w1_ref, b1_ref, w2_ref, b2_ref, out_ref, *, compute_dtype):
    # Entire hot path (2 matmuls + bias + relu + sigmoid) runs inside the kernel.
    x = x_ref[...].astype(compute_dtype)                         # (TB, in_p)
    h = jnp.dot(x, w1_ref[...].astype(compute_dtype),
                preferred_element_type=jnp.float32)              # MXU, f32 acc
    h = jnp.maximum(h + b1_ref[...], 0.0)                        # f32 VPU (v5e-safe)
    z = jnp.dot(h.astype(compute_dtype), w2_ref[...].astype(compute_dtype),
                preferred_element_type=jnp.float32)              # MXU, f32 acc
    z = z + b2_ref[...]
    out_ref[...] = jax.nn.sigmoid(z).astype(out_ref.dtype)       # sigmoid on EUP


@functools.partial(jax.jit, static_argnames=("block_b", "compute_dtype"))
def decoder_forward(x, w1, b1, w2, b2, *, block_b=None, compute_dtype=jnp.float32):
    """x: (B, in_dim); w1: (in_dim, H); b1: (1, H); w2: (H, out_dim); b2: (1, out_dim).

    Weights are stored pre-transposed (in_features, out_features) so the kernel
    runs plain `x @ W` on the MXU.
    """
    B, in_dim = x.shape
    hidden = w1.shape[1]
    out_dim = w2.shape[1]

    # --- lane-dense padding of all feature dims to multiples of 128 ---------
    in_p = _round_up(in_dim, 128)
    h_p = _round_up(hidden, 128)
    out_p = _round_up(out_dim, 128)

    # --- batch tile: whole batch when small, 512-row tiles when large -------
    if block_b is None:
        block_b = min(512, _round_up(B, 8))
    block_b = _round_up(block_b, 8)          # f32 sublane granularity
    B_p = _round_up(B, block_b)              # pad batch instead of hard assert

    xp = jnp.pad(x, ((0, B_p - B), (0, in_p - in_dim)))
    w1p = jnp.pad(w1, ((0, in_p - in_dim), (0, h_p - hidden)))
    b1p = jnp.pad(b1, ((0, 0), (0, h_p - hidden)))
    w2p = jnp.pad(w2, ((0, h_p - hidden), (0, out_p - out_dim)))
    b2p = jnp.pad(b2, ((0, 0), (0, out_p - out_dim)))

    grid = (B_p // block_b,)

    # Advisory cost so XLA overlaps this tiny call with surrounding ops.
    itemsize = jnp.dtype(x.dtype).itemsize
    cost = pl.CostEstimate(
        flops=2 * B_p * (in_p * h_p + h_p * out_p),
        transcendentals=B_p * out_p,
        bytes_accessed=itemsize * (B_p * in_p + in_p * h_p + h_p
                                   + h_p * out_p + out_p + B_p * out_p),
    )

    out_padded = pl.pallas_call(
        functools.partial(decoder_kernel, compute_dtype=compute_dtype),
        out_shape=jax.ShapeDtypeStruct((B_p, out_p), x.dtype),
        grid_spec=pltpu.PrefetchScalarGridSpec(
            num_scalar_prefetch=0,
            grid=grid,
            in_specs=[
                # batch-tiled activations
                pl.BlockSpec((block_b, in_p), lambda i: (i, 0)),
                # weights / biases: full arrays, resident across the grid
                pl.BlockSpec((in_p, h_p), lambda i: (0, 0)),
                pl.BlockSpec((1, h_p), lambda i: (0, 0)),
                pl.BlockSpec((h_p, out_p), lambda i: (0, 0)),
                pl.BlockSpec((1, out_p), lambda i: (0, 0)),
            ],
            # lane-dense (multiple-of-128) output -> unmasked vst
            out_specs=pl.BlockSpec((block_b, out_p), lambda i: (i, 0)),
        ),
        compiler_params=pltpu.CompilerParams(
            dimension_semantics=("parallel",),   # shards grid steps across TCs on v7x
        ),
        cost_estimate=cost,
    )(xp, w1p, b1p, w2p, b2p)

    # Strip batch / output-lane padding.
    return out_padded[:B, :out_dim]


def init_decoder_params(key, in_dim, hidden_size, out_dim, dtype=jnp.float32):
    """Deterministic init mimicking nn.Linear default (uniform +-1/sqrt(fan_in)).

    Weights are returned already transposed to (in_features, out_features).
    """
    k1, k2, k3, k4 = jax.random.split(key, 4)
    bound1 = 1.0 / jnp.sqrt(in_dim)
    bound2 = 1.0 / jnp.sqrt(hidden_size)
    w1 = jax.random.uniform(k1, (in_dim, hidden_size), dtype, -bound1, bound1)
    b1 = jax.random.uniform(k2, (1, hidden_size), dtype, -bound1, bound1)
    w2 = jax.random.uniform(k3, (hidden_size, out_dim), dtype, -bound2, bound2)
    b2 = jax.random.uniform(k4, (1, out_dim), dtype, -bound2, bound2)
    return w1, b1, w2, b2


def decoder_reference(x, w1, b1, w2, b2):
    h = jnp.maximum(x @ w1 + b1, 0.0)
    return jax.nn.sigmoid(h @ w2 + b2)


if __name__ == "__main__":
    key = jax.random.PRNGKey(0)
    kx, kp, kx2 = jax.random.split(key, 3)

    # Small shapes consistent with a VAE mean-field decoder:
    # latent in_dim=8, hidden=32, out_dim=64 (flattened 8x8 image), batch=8.
    B, in_dim, hidden_size, out_dim = 8, 8, 32, 64

    x = jax.random.normal(kx, (B, in_dim), dtype=jnp.float32)
    w1, b1, w2, b2 = init_decoder_params(kp, in_dim, hidden_size, out_dim)

    # Small-batch path: whole batch in a single grid step.
    out = decoder_forward(x, w1, b1, w2, b2)
    out = jax.block_until_ready(out)
    ref = decoder_reference(x, w1, b1, w2, b2)
    assert out.shape == (B, out_dim)
    assert jnp.allclose(out, ref, atol=1e-5, rtol=1e-5), "mismatch vs reference (small batch)"

    # Larger-batch path: multi-step parallel grid (exercises batch tiling).
    B2 = 512
    x2 = jax.random.normal(kx2, (B2, in_dim), dtype=jnp.float32)
    out2 = decoder_forward(x2, w1, b1, w2, b2, block_b=256)
    out2 = jax.block_until_ready(out2)
    ref2 = decoder_reference(x2, w1, b1, w2, b2)
    assert out2.shape == (B2, out_dim)
    assert jnp.allclose(out2, ref2, atol=1e-5, rtol=1e-5), "mismatch vs reference (tiled batch)"

    print("KERNEL_OK")
</pallas_src>

<mosaic_0001>
module attributes {stable_mosaic.version = 11 : i64} {
  func.func @decoder_kernel(%arg0: i32, %arg1: memref<8x128xf32, #tpu.memory_space<vmem>>, %arg2: memref<128x128xf32, #tpu.memory_space<vmem>>, %arg3: memref<1x128xf32, #tpu.memory_space<vmem>>, %arg4: memref<128x128xf32, #tpu.memory_space<vmem>>, %arg5: memref<1x128xf32, #tpu.memory_space<vmem>>, %arg6: memref<8x128xf32, #tpu.memory_space<vmem>>) attributes {dimension_semantics = [#tpu.dimension_semantics<parallel>], iteration_bounds = array<i64: 1>, scalar_prefetch = 0 : i64, scratch_operands = 0 : i64, tpu.core_type = #tpu.core_type<tc>, window_params = [{transform_indices = @transform_0, window_bounds = array<i64: 8, 128>}, {pipeline_mode = #tpu.pipeline_mode<synchronous>, transform_indices = @transform_1, window_bounds = array<i64: 128, 128>}, {pipeline_mode = #tpu.pipeline_mode<synchronous>, transform_indices = @transform_2, window_bounds = array<i64: 1, 128>}, {pipeline_mode = #tpu.pipeline_mode<synchronous>, transform_indices = @transform_3, window_bounds = array<i64: 128, 128>}, {pipeline_mode = #tpu.pipeline_mode<synchronous>, transform_indices = @transform_4, window_bounds = array<i64: 1, 128>}, {transform_indices = @transform_5, window_bounds = array<i64: 8, 128>}]} {
    %c0 = arith.constant 0 : index
    %c0_0 = arith.constant 0 : index
    %0 = vector.load %arg1[%c0, %c0_0] : memref<8x128xf32, #tpu.memory_space<vmem>>, vector<8x128xf32>
    %c0_1 = arith.constant 0 : index
    %c0_2 = arith.constant 0 : index
    %1 = vector.load %arg2[%c0_1, %c0_2] : memref<128x128xf32, #tpu.memory_space<vmem>>, vector<128x128xf32>
    %cst = arith.constant dense<0.000000e+00> : vector<8x128xf32>
    %2 = tpu.matmul %0, %1, %cst {dimension_numbers = #tpu.dot_dimension_numbers<[1], [0], [0], [1], [0, 0, 1, 1], [], []>} : vector<8x128xf32>, vector<128x128xf32>, vector<8x128xf32> -> vector<8x128xf32>
    %c0_3 = arith.constant 0 : index
    %c0_4 = arith.constant 0 : index
    %3 = vector.load %arg3[%c0_3, %c0_4] : memref<1x128xf32, #tpu.memory_space<vmem>>, vector<1x128xf32>
    %4 = vector.broadcast %3 : vector<1x128xf32> to vector<8x128xf32>
    %5 = arith.addf %2, %4 : vector<8x128xf32>
    %cst_5 = arith.constant 0.000000e+00 : f32
    %6 = vector.broadcast %cst_5 : f32 to vector<8x128xf32>
    %7 = arith.maximumf %5, %6 : vector<8x128xf32>
    %c0_6 = arith.constant 0 : index
    %c0_7 = arith.constant 0 : index
    %8 = vector.load %arg4[%c0_6, %c0_7] : memref<128x128xf32, #tpu.memory_space<vmem>>, vector<128x128xf32>
    %cst_8 = arith.constant dense<0.000000e+00> : vector<8x128xf32>
    %9 = tpu.matmul %7, %8, %cst_8 {dimension_numbers = #tpu.dot_dimension_numbers<[1], [0], [0], [1], [0, 0, 1, 1], [], []>} : vector<8x128xf32>, vector<128x128xf32>, vector<8x128xf32> -> vector<8x128xf32>
    %c0_9 = arith.constant 0 : index
    %c0_10 = arith.constant 0 : index
    %10 = vector.load %arg5[%c0_9, %c0_10] : memref<1x128xf32, #tpu.memory_space<vmem>>, vector<1x128xf32>
    %11 = vector.broadcast %10 : vector<1x128xf32> to vector<8x128xf32>
    %12 = arith.addf %9, %11 : vector<8x128xf32>
    %13 = arith.negf %12 : vector<8x128xf32>
    %14 = math.exp %13 : vector<8x128xf32>
    %cst_11 = arith.constant 1.000000e+00 : f32
    %15 = vector.broadcast %cst_11 : f32 to vector<8x128xf32>
    %16 = arith.addf %15, %14 : vector<8x128xf32>
    %17 = arith.divf %15, %16 : vector<8x128xf32>
    %c0_12 = arith.constant 0 : index
    %c0_13 = arith.constant 0 : index
    %18 = vector.load %arg6[%c0_12, %c0_13] : memref<8x128xf32, #tpu.memory_space<vmem>>, vector<8x128xf32>
    tpu.vector_store %arg6[%c0_12, %c0_13], %17 {strides = array<i32>} : memref<8x128xf32, #tpu.memory_space<vmem>>, vector<8x128xf32>,
    return
  }
  func.func @transform_0(%arg0: i32) -> (i32, i32) {
    %c0_i32 = arith.constant 0 : i32
    %c0_i32_0 = arith.constant 0 : i32
    return %arg0, %c0_i32 : i32, i32
  }
  func.func @transform_1(%arg0: i32) -> (i32, i32) {
    %c0_i32 = arith.constant 0 : i32
    %c0_i32_0 = arith.constant 0 : i32
    %c0_i32_1 = arith.constant 0 : i32
    return %c0_i32, %c0_i32_0 : i32, i32
  }
  func.func @transform_2(%arg0: i32) -> (i32, i32) {
    %c0_i32 = arith.constant 0 : i32
    %c0_i32_0 = arith.constant 0 : i32
    %c0_i32_1 = arith.constant 0 : i32
    return %c0_i32, %c0_i32_0 : i32, i32
  }
  func.func @transform_3(%arg0: i32) -> (i32, i32) {
    %c0_i32 = arith.constant 0 : i32
    %c0_i32_0 = arith.constant 0 : i32
    %c0_i32_1 = arith.constant 0 : i32
    return %c0_i32, %c0_i32_0 : i32, i32
  }
  func.func @transform_4(%arg0: i32) -> (i32, i32) {
    %c0_i32 = arith.constant 0 : i32
    %c0_i32_0 = arith.constant 0 : i32
    %c0_i32_1 = arith.constant 0 : i32
    return %c0_i32, %c0_i32_0 : i32, i32
  }
  func.func @transform_5(%arg0: i32) -> (i32, i32) {
    %c0_i32 = arith.constant 0 : i32
    %c0_i32_0 = arith.constant 0 : i32
    return %arg0, %c0_i32 : i32, i32
  }
}

</mosaic_0001>

<bundles_post_ra>
// kernel: decoder_forward.1
= control target key start
LH: loop header
LB: loop body
LE: loop exit
PB: predicated region body
PF: predicated region fallthrough
CT: control target
= control target key end

     0   :  { %s312_s0 = inlined_call_operand.vmem [shape: f32[8,128], index: 0, kind: input, shape index: {}]   ;;  %s313_s1 = inlined_call_operand.vmem [shape: f32[128,128], index: 1, kind: input, shape index: {}]   ;;  %s314_s2 = inlined_call_operand.vmem [shape: f32[1,128], index: 2, kind: input, shape index: {}]   ;;  %s315_s3 = inlined_call_operand.vmem [shape: f32[128,128], index: 3, kind: input, shape index: {}]   ;;  %s316_s4 = inlined_call_operand.vmem [shape: f32[1,128], index: 4, kind: input, shape index: {}]   ;;  %s317_s5 = inlined_call_operand.hbm [shape: f32[8,128], index: 5, kind: output, shape index: {}]  }
   0x1   :  { %v37_v0 = vld [vmem:[%s313_s1 + $0x78] sm:$0xff]  ;;  %v36_v1 = vld [vmem:[%s313_s1 + $0x70] sm:$0xff]  ;;  %v35_v2 = vld [vmem:[%s313_s1 + $0x68] sm:$0xff] }
   0x2   :  { %42 = vmatpush.msra.mxu0 %v37_v0  ;;  %v34_v3 = vld [vmem:[%s313_s1 + $0x60] sm:$0xff]  ;;  %v78_v4 = vld [vmem:[%s315_s3 + $0x78] sm:$0xff]  ;;  %v77_v6 = vld [vmem:[%s315_s3 + $0x70] sm:$0xff] }
   0x3   :  { %v33_v5 = vld [vmem:[%s313_s1 + $0x58] sm:$0xff]  ;;  %83 = vmatpush.msra.mxu1 %v78_v4  ;;  %v76_v7 = vld [vmem:[%s315_s3 + $0x68] sm:$0xff]  ;;  %v32_v8 = vld [vmem:[%s313_s1 + $0x50] sm:$0xff] }
   0x4   :  { %43 = vmatpush.msra.mxu0 %v36_v1  ;;  %v75_v9 = vld [vmem:[%s315_s3 + $0x60] sm:$0xff]  ;;  %v31_v10 = vld [vmem:[%s313_s1 + $0x48] sm:$0xff]  ;;  %v74_v11 = vld [vmem:[%s315_s3 + $0x58] sm:$0xff] }
   0x5   :  { %84 = vmatpush.msra.mxu1 %v77_v6 }
   0x6   :  { %44 = vmatpush.msra.mxu0 %v35_v2 }
   0x7   :  { %85 = vmatpush.msra.mxu1 %v76_v7 }
   0x8   :  { %45 = vmatpush.msra.mxu0 %v34_v3 }
   0xa   :  { %46 = vmatpush.msra.mxu0 %v33_v5 }
   0xc   :  { %47 = vmatpush.msra.mxu0 %v32_v8 }
   0xd   :  { %10 = vsyncpa [#allocation3], 0  ;;  %v30_v12 = vld [vmem:[%s313_s1 + $0x40] sm:$0xff]  ;;  %86 = vmatpush.msra.mxu1 %v75_v9  ;;  %v73_v13 = vld [vmem:[%s315_s3 + $0x50] sm:$0xff] }
   0xe   :  { %48 = vmatpush.msra.mxu0 %v31_v10  ;;  %v29_v14 = vld [vmem:[%s313_s1 + $0x38] sm:$0xff]  ;;  %v72_v15 = vld [vmem:[%s315_s3 + $0x48] sm:$0xff]  ;;  %v28_v16 = vld [vmem:[%s313_s1 + $0x30] sm:$0xff] }
   0xf   :  { %87 = vmatpush.msra.mxu1 %v74_v11  ;;  %v71_v17 = vld [vmem:[%s315_s3 + $0x40] sm:$0xff]  ;;  %v27_v18 = vld [vmem:[%s313_s1 + $0x28] sm:$0xff]  ;;  %v70_v19 = vld [vmem:[%s315_s3 + $0x38] sm:$0xff] }
  0x10   :  { %49 = vmatpush.msra.mxu0 %v30_v12  ;;  %v26_v20 = vld [vmem:[%s313_s1 + $0x20] sm:$0xff]  ;;  %v69_v21 = vld [vmem:[%s315_s3 + $0x30] sm:$0xff]  ;;  %v25_v22 = vld [vmem:[%s313_s1 + $0x18] sm:$0xff] }
  0x11   :  { %88 = vmatpush.msra.mxu1 %v73_v13  ;;  %v68_v23 = vld [vmem:[%s315_s3 + $0x28] sm:$0xff]  ;;  %v24_v24 = vld [vmem:[%s313_s1 + $0x10] sm:$0xff]  ;;  %v67_v25 = vld [vmem:[%s315_s3 + $0x20] sm:$0xff] }
  0x12   :  { %50 = vmatpush.msra.mxu0 %v29_v14  ;;  %v23_v26 = vld [vmem:[%s313_s1 + $0x8] sm:$0xff]  ;;  %v66_v27 = vld [vmem:[%s315_s3 + $0x18] sm:$0xff]  ;;  %v22_v28 = vld [vmem:[%s313_s1] sm:$0xff] }
  0x13   :  { %89 = vmatpush.msra.mxu1 %v72_v15  ;;  %v21_v29 = vld [vmem:[%s312_s0] sm:$0xff]  ;;  %v65_v30 = vld [vmem:[%s315_s3 + $0x10] sm:$0xff]  ;;  %v64_v31 = vld [vmem:[%s315_s3 + $0x8] sm:$0xff] }
  0x14   :  { %51 = vmatpush.msra.mxu0 %v28_v16  ;;  %v63_v32 = vld [vmem:[%s315_s3] sm:$0xff] }
  0x15   :  { %90 = vmatpush.msra.mxu1 %v71_v17  ;;  %v141_v33 = vld [vmem:[%s314_s2] ss:$0 sm:$0xff]  ;;  %s173_s2 = smov [#allocation2]  }
  0x16   :  { %52 = vmatpush.msra.mxu0 %v27_v18  ;;  %v142_v37 = vld [vmem:[%s316_s4] ss:$0 sm:$0xff]  ;;  %s128_s3 = sshll.u32 %s173_s2, 4  ;;  %s130_s4 = sshll.u32 %s317_s5, 4  ;;  %s129_s3 = int_to_ptr.vmem [resolvable:$true] %s128_s3  ;;  %s131_s4 = int_to_ptr.hbm [resolvable:$true] %s130_s4 }
  0x17   :  { %91 = vmatpush.msra.mxu1 %v70_v19 }
  0x18   :  { %53 = vmatpush.msra.mxu0 %v26_v20 }
  0x19   :  { %92 = vmatpush.msra.mxu1 %v69_v21 }
  0x1a   :  { %54 = vmatpush.msra.mxu0 %v25_v22 }
  0x1b   :  { %93 = vmatpush.msra.mxu1 %v68_v23 }
  0x1c   :  { %55 = vmatpush.msra.mxu0 %v24_v24 }
  0x1d   :  { %94 = vmatpush.msra.mxu1 %v67_v25 }
  0x1e   :  { %56 = vmatpush.msra.mxu0 %v23_v26 }
  0x1f   :  { %95 = vmatpush.msra.mxu1 %v66_v27 }
  0x20   :  { %57 = vmatpush.msra.mxu0 %v22_v28 }
  0x21   :  { %58 = vmatmul.f32.vlgmr.msra.gmra.mxu0 %v21_v29  ;;  %96 = vmatpush.msra.mxu1 %v65_v30 }
  0x23   :  { %97 = vmatpush.msra.mxu1 %v64_v31 }
  0x25   :  { %98 = vmatpush.msra.mxu1 %v63_v32 }
  0x9e   :  { %v59_v34 = vpop.f32.mrf.mxu0 }
  0x9f   :  { %v60_v35 = vadd.f32 %v141_v33, %v59_v34 }
  0xa1   :  { %v62_v36 = vmax.f32 %v60_v35, 0.0 }
  0xa3   :  { %99 = vmatmul.f32.vlgmr.msra.gmra.mxu1 %v62_v36 }
 0x120   :  { %v100_v38 = vpop.f32.mrf.mxu1 }
 0x121   :  { %v101_v39 = vadd.f32 %v142_v37, %v100_v38 }
 0x123   :  { %v139_v40 = vmul.f32 -1.442695, %v101_v39 }
 0x125   :  { %143 = vpow2.f32 %v139_v40 }
 0x12b   :  { %v144_v41 = vpop.eup %143 }
 0x12c   :  { %v106_v42 = vadd.f32 1.0, %v144_v41 }
 0x12e   :  { %145 = vrcp.f32 %v106_v42  ;;  %v118_v46 = vand.u32 2147483648, %v106_v42  ;;  %v116_v48 = vand.u32 2147483647, %v106_v42  ;;  %vm112_vm1 = vweird.f32 %v106_v42 }
 0x130   :  { %v119_v50 = vor.u32 1.1754944e-38, %v118_v46  ;;  %vm117_vm3 = vcmp.eq.f32.partialorder %v116_v48, 8.507059e+37 }
 0x134   :  { %v146_v43 = vpop.eup %145 }
 0x135   :  { %v108_v44 = vmul.f32 %v146_v43, %v106_v42  ;;  %vm113_vm0 = vweird.f32 %v146_v43 }
 0x136   :  { %vm114_vm2 = vmor %vm112_vm1, %vm113_vm0 }
 0x137   :  { %v109_v45 = vsub.f32 1.0, %v108_v44 }
 0x139   :  { %v110_v47 = vmul.f32 %v146_v43, %v109_v45 }
 0x13b   :  { %v111_v49 = vadd.f32 %v146_v43, %v110_v47 }
 0x13d   :  { %v115_v51 = vsel %vm114_vm2, %v146_v43, %v111_v49 }
 0x13e   :  { %v120_v52 = vsel %vm117_vm3, %v119_v50, %v115_v51 }
 0x13f   :  { %122 = vst [vmem:[#allocation2] sm:$0xff] %v120_v52 }
 0x140   :  { %133 = dma.vmem_to_hbm [thread:$0]  %s129_s3, 128, %s131_s4, [#allocation3]  }
 0x141   :  { %171 = dma.done.wait [#allocation3], 128  }
 0x142   :  { %172 = vsyncadd [#allocation3], 4294967168 }
 0x143   :  { %138 = vsyncpa [#allocation3], 1 }

</bundles_post_ra>
